<compile_context>
chip_gen: v6e
topology: v6e:2x2x1
jax: 0.10.0
libtpu: 0.0.40
codegen_flags: <defaults>
</compile_context>

<pallas_src>
import jax
import jax.numpy as jnp
from jax.experimental import pallas as pl
from jax.experimental.pallas import tpu as pltpu

_LANES = 128  # lane width; classifier output is padded to this


def _round_up(x, m):
    return ((x + m - 1) // m) * m


def _cdiv(a, b):
    return -(-a // b)


def _vmem_capacity_bytes():
    """Physical VMEM of the current part; conservative fallback if unqueryable."""
    try:
        return int(pltpu.get_tpu_info().vmem_capacity_bytes)
    except Exception:
        return 64 * 1024 * 1024  # assume v7x-sized per-TC VMEM


def _choose_tiling(B, vmem_capacity):
    """Pick (tile_rows, n_tiles) for the batch grid.

    - Up to 1024 rows/tile on 128-MiB-VMEM parts (v5e/v6e) to amortize the
      ~0.35 us/step grid overhead; cap at 512 on 64-MiB parts (v7x).
    - Equal-ish tiles so round-up padding is <= 15 rows (not ~2x work).
    - >= 2 tiles (when the batch is big enough) so dimension_semantics
      ("parallel",) actually shards across v7x's two TensorCores; the extra
      grid step is noise on single-TC chips.
    - Tile rows are a multiple of 16 for bf16 sublane packing.
    """
    cap = 1024 if vmem_capacity >= (100 << 20) else 512
    n = max(1, _cdiv(B, cap))
    if B >= 32 and n < 2:
        n = 2
    tb = _round_up(_cdiv(B, n), 16)
    return tb, n


def _head_kernel(x_ref, wp_ref, bp_ref, w1_ref, b1_ref, w2_ref, b2_ref, out_ref):
    """Fused head on one (TB, H) batch tile.

    pooler(tanh) -> [dropout = identity, eval mode] -> Linear -> ReLU -> Linear.
    bf16 operands on the MXU, f32 accumulation and elementwise math, bf16 store.
    """
    x = x_ref[...]                                               # [TB, H] bf16

    # BERT pooler: tanh(x @ Wp + bp)   -> this is bert_output[1]
    pooled = jnp.tanh(
        jnp.dot(x, wp_ref[...], preferred_element_type=jnp.float32) + bp_ref[...]
    )

    # dropout: identity in eval mode

    # hidden_layer + ReLU
    h = jnp.dot(pooled.astype(jnp.bfloat16), w1_ref[...],
                preferred_element_type=jnp.float32) + b1_ref[...]
    h = jnp.maximum(h, 0.0)

    # classifier (padded to 128 lanes; columns 2..127 of W/b are zero)
    logits = jnp.dot(h.astype(jnp.bfloat16), w2_ref[...],
                     preferred_element_type=jnp.float32) + b2_ref[...]
    out_ref[...] = logits.astype(out_ref.dtype)                  # [TB, 128] bf16


def dialog_head(pooler_input, wp, bp, w1, b1, w2p, b2p):
    """pooler_input: [B, H] float; returns logits [B, 2] float32."""
    B, H = pooler_input.shape
    if B == 0:
        return jnp.zeros((0, 2), jnp.float32)

    vmem_cap = _vmem_capacity_bytes()
    tb, n_tiles = _choose_tiling(B, vmem_cap)
    Bp = tb * n_tiles

    x = pooler_input.astype(jnp.bfloat16)
    if Bp != B:
        x = jnp.pad(x, ((0, Bp - B), (0, 0)))

    # Advisory cost estimate so XLA overlaps the embedding gather with us.
    weight_bytes = 2 * H * H * 2 + H * _LANES * 2 + (2 * H + _LANES) * 4
    step_bytes = tb * H * 2 + tb * _LANES * 2
    cost = pl.CostEstimate(
        flops=2 * Bp * H * (2 * H + _LANES),
        transcendentals=Bp * H,
        bytes_accessed=weight_bytes + n_tiles * step_bytes,
    )

    # VMEM budget: single-buffered bf16 weights + double-buffered x/out tiles +
    # f32 intermediates, with headroom, capped at 3/4 of physical VMEM
    # (48 MiB on a 64-MiB v7x part, 96 MiB on 128-MiB v5e/v6e).
    vmem_bytes = (weight_bytes                # Buffered(1) weights, counted once
                  + 2 * tb * H * 2            # double-buffered x tiles
                  + 2 * tb * _LANES * 2       # double-buffered out tiles (bf16)
                  + 4 * tb * H * 4)           # f32 intermediates
    vmem_limit = int(max(16 << 20, min(2 * vmem_bytes, (vmem_cap * 3) // 4)))

    # Grid-invariant weights/biases: VMEM-resident, single-buffered.
    def wspec(shape):
        return pl.BlockSpec(shape, lambda i: (0, 0), pipeline_mode=pl.Buffered(1))

    # TODO(synk): for H >= 2048 on 64-MiB-VMEM parts (v7x) add a K-tiled
    # fallback ('arbitrary' K grid axis + f32 acc scratch) instead of keeping
    # both HxH weights fully resident.

    out = pl.pallas_call(
        _head_kernel,
        out_shape=jax.ShapeDtypeStruct((Bp, _LANES), jnp.bfloat16),
        grid=(n_tiles,),
        in_specs=[
            pl.BlockSpec((tb, H), lambda i: (i, 0)),   # x tile (pipelined)
            wspec((H, H)),                             # pooler W (resident)
            wspec((1, H)),                             # pooler b
            wspec((H, H)),                             # hidden W (resident)
            wspec((1, H)),                             # hidden b
            wspec((H, _LANES)),                        # classifier W (padded)
            wspec((1, _LANES)),                        # classifier b (padded)
        ],
        out_specs=pl.BlockSpec((tb, _LANES), lambda i: (i, 0)),
        compiler_params=pltpu.CompilerParams(
            dimension_semantics=("parallel",),
            vmem_limit_bytes=vmem_limit,
        ),
        cost_estimate=cost,
    )(x, wp, bp, w1, b1, w2p, b2p)

    return out[:B, :2].astype(jnp.float32)


def bert_stand_in_pooled_input(input_ids, attention_mask, embed_table):
    """Deterministic stand-in for the injected bert_model up to the pooler input.

    Token embedding gather (bf16 table) + attention-mask-weighted mean over the
    sequence, accumulated in f32.
    """
    # TODO(synk): the external bert_model encoder stack is not reproducible
    # without a checkpoint; a deterministic embedding masked-mean stands in.
    # Next step: fuse this gather+reduce into the Pallas kernel via
    # PrefetchScalarGridSpec row gather once S dominates bytes moved.
    emb = jnp.take(embed_table, input_ids, axis=0)              # [B, S, H] bf16
    mask = attention_mask.astype(jnp.float32)[..., None]        # [B, S, 1]
    summed = jnp.sum(emb * mask, axis=1)                        # [B, H] f32
    denom = jnp.maximum(jnp.sum(mask, axis=1), 1.0)             # [B, 1]
    return summed / denom                                       # [B, H] f32


def dialog_finetune_forward(input_ids, attention_mask,
                            previous_utterance_representations, params):
    del previous_utterance_representations  # unused in the reference forward
    x = bert_stand_in_pooled_input(input_ids, attention_mask, params["embed"])
    return dialog_head(
        x,
        params["wp"], params["bp"],
        params["w1"], params["b1"],
        params["w2p"], params["b2p"],
    )


def init_params(key, vocab_size, bert_hidden_size):
    H = bert_hidden_size
    ks = jax.random.split(key, 7)
    lim = 1.0 / jnp.sqrt(jnp.float32(H))
    u = lambda k, shape, l: jax.random.uniform(k, shape, jnp.float32, -l, l)

    w2 = u(ks[5], (H, 2), lim)
    b2 = u(ks[6], (1, 2), lim)
    # Zero-pad classifier to 128 lanes so the kernel writes a lane-dense block;
    # padded columns are exactly zero so the [:, :2] slice is unchanged.
    w2p = jnp.zeros((H, _LANES), jnp.float32).at[:, :2].set(w2)
    b2p = jnp.zeros((1, _LANES), jnp.float32).at[:, :2].set(b2)

    return {
        # bf16 embedding table halves the gather bytes of the memory-bound stage
        "embed": (0.02 * jax.random.normal(ks[0], (vocab_size, H),
                                           jnp.float32)).astype(jnp.bfloat16),
        "wp": u(ks[1], (H, H), lim).astype(jnp.bfloat16),   # pooler dense (stand-in)
        "bp": u(ks[2], (1, H), lim),
        "w1": u(ks[3], (H, H), lim).astype(jnp.bfloat16),   # hidden_layer
        "b1": u(ks[4], (1, H), lim),
        "w2p": w2p.astype(jnp.bfloat16),                    # classifier (padded)
        "b2p": b2p,
    }


if __name__ == "__main__":
    B, S, H = 2, 8, 32
    VOCAB = 64
    SBERT_H = 16

    key = jax.random.PRNGKey(0)
    k_ids, k_prev, k_params = jax.random.split(key, 3)

    input_ids = jax.random.randint(k_ids, (B, S), 0, VOCAB, dtype=jnp.int32)
    attention_mask = jnp.ones((B, S), dtype=jnp.int32).at[:, S - 2:].set(0)
    previous_utterance_representations = jax.random.normal(
        k_prev, (B, SBERT_H), jnp.float32)

    params = init_params(k_params, VOCAB, H)

    logits = dialog_finetune_forward(
        input_ids, attention_mask, previous_utterance_representations, params)
    logits = jax.block_until_ready(logits)

    assert logits.shape == (B, 2) and logits.dtype == jnp.float32
    print("KERNEL_OK")
</pallas_src>

<mosaic_0001>
module attributes {stable_mosaic.version = 11 : i64} {
  func.func @_head_kernel(%arg0: i32, %arg1: memref<16x32xbf16, #tpu.memory_space<vmem>>, %arg2: memref<32x32xbf16, #tpu.memory_space<vmem>>, %arg3: memref<1x32xf32, #tpu.memory_space<vmem>>, %arg4: memref<32x32xbf16, #tpu.memory_space<vmem>>, %arg5: memref<1x32xf32, #tpu.memory_space<vmem>>, %arg6: memref<32x128xbf16, #tpu.memory_space<vmem>>, %arg7: memref<1x128xf32, #tpu.memory_space<vmem>>, %arg8: memref<16x128xbf16, #tpu.memory_space<vmem>>) attributes {dimension_semantics = [#tpu.dimension_semantics<parallel>], iteration_bounds = array<i64: 1>, scalar_prefetch = 0 : i64, scratch_operands = 0 : i64, tpu.core_type = #tpu.core_type<tc>, window_params = [{transform_indices = @transform_0, window_bounds = array<i64: 16, 32>}, {pipeline_mode = #tpu.pipeline_mode<synchronous>, transform_indices = @transform_1, window_bounds = array<i64: 32, 32>}, {pipeline_mode = #tpu.pipeline_mode<synchronous>, transform_indices = @transform_2, window_bounds = array<i64: 1, 32>}, {pipeline_mode = #tpu.pipeline_mode<synchronous>, transform_indices = @transform_3, window_bounds = array<i64: 32, 32>}, {pipeline_mode = #tpu.pipeline_mode<synchronous>, transform_indices = @transform_4, window_bounds = array<i64: 1, 32>}, {pipeline_mode = #tpu.pipeline_mode<synchronous>, transform_indices = @transform_5, window_bounds = array<i64: 32, 128>}, {pipeline_mode = #tpu.pipeline_mode<synchronous>, transform_indices = @transform_6, window_bounds = array<i64: 1, 128>}, {transform_indices = @transform_7, window_bounds = array<i64: 16, 128>}]} {
    %c0 = arith.constant 0 : index
    %c0_0 = arith.constant 0 : index
    %0 = vector.load %arg1[%c0, %c0_0] : memref<16x32xbf16, #tpu.memory_space<vmem>>, vector<16x32xbf16>
    %c0_1 = arith.constant 0 : index
    %c0_2 = arith.constant 0 : index
    %1 = vector.load %arg2[%c0_1, %c0_2] : memref<32x32xbf16, #tpu.memory_space<vmem>>, vector<32x32xbf16>
    %cst = arith.constant dense<0.000000e+00> : vector<16x32xf32>
    %2 = tpu.matmul %0, %1, %cst {dimension_numbers = #tpu.dot_dimension_numbers<[1], [0], [0], [1], [0, 0, 1, 1], [], []>} : vector<16x32xbf16>, vector<32x32xbf16>, vector<16x32xf32> -> vector<16x32xf32>
    %c0_3 = arith.constant 0 : index
    %c0_4 = arith.constant 0 : index
    %3 = vector.load %arg3[%c0_3, %c0_4] : memref<1x32xf32, #tpu.memory_space<vmem>>, vector<1x32xf32>
    %4 = vector.broadcast %3 : vector<1x32xf32> to vector<16x32xf32>
    %5 = arith.addf %2, %4 : vector<16x32xf32>
    %6 = math.tanh %5 : vector<16x32xf32>
    %7 = arith.truncf %6 : vector<16x32xf32> to vector<16x32xbf16>
    %c0_5 = arith.constant 0 : index
    %c0_6 = arith.constant 0 : index
    %8 = vector.load %arg4[%c0_5, %c0_6] : memref<32x32xbf16, #tpu.memory_space<vmem>>, vector<32x32xbf16>
    %cst_7 = arith.constant dense<0.000000e+00> : vector<16x32xf32>
    %9 = tpu.matmul %7, %8, %cst_7 {dimension_numbers = #tpu.dot_dimension_numbers<[1], [0], [0], [1], [0, 0, 1, 1], [], []>} : vector<16x32xbf16>, vector<32x32xbf16>, vector<16x32xf32> -> vector<16x32xf32>
    %c0_8 = arith.constant 0 : index
    %c0_9 = arith.constant 0 : index
    %10 = vector.load %arg5[%c0_8, %c0_9] : memref<1x32xf32, #tpu.memory_space<vmem>>, vector<1x32xf32>
    %11 = vector.broadcast %10 : vector<1x32xf32> to vector<16x32xf32>
    %12 = arith.addf %9, %11 : vector<16x32xf32>
    %cst_10 = arith.constant 0.000000e+00 : f32
    %13 = vector.broadcast %cst_10 : f32 to vector<16x32xf32>
    %14 = arith.maximumf %12, %13 : vector<16x32xf32>
    %15 = arith.truncf %14 : vector<16x32xf32> to vector<16x32xbf16>
    %c0_11 = arith.constant 0 : index
    %c0_12 = arith.constant 0 : index
    %16 = vector.load %arg6[%c0_11, %c0_12] : memref<32x128xbf16, #tpu.memory_space<vmem>>, vector<32x128xbf16>
    %cst_13 = arith.constant dense<0.000000e+00> : vector<16x128xf32>
    %17 = tpu.matmul %15, %16, %cst_13 {dimension_numbers = #tpu.dot_dimension_numbers<[1], [0], [0], [1], [0, 0, 1, 1], [], []>} : vector<16x32xbf16>, vector<32x128xbf16>, vector<16x128xf32> -> vector<16x128xf32>
    %c0_14 = arith.constant 0 : index
    %c0_15 = arith.constant 0 : index
    %18 = vector.load %arg7[%c0_14, %c0_15] : memref<1x128xf32, #tpu.memory_space<vmem>>, vector<1x128xf32>
    %19 = vector.broadcast %18 : vector<1x128xf32> to vector<16x128xf32>
    %20 = arith.addf %17, %19 : vector<16x128xf32>
    %21 = arith.truncf %20 : vector<16x128xf32> to vector<16x128xbf16>
    %c0_16 = arith.constant 0 : index
    %c0_17 = arith.constant 0 : index
    %22 = vector.load %arg8[%c0_16, %c0_17] : memref<16x128xbf16, #tpu.memory_space<vmem>>, vector<16x128xbf16>
    tpu.vector_store %arg8[%c0_16, %c0_17], %21 {strides = array<i32>} : memref<16x128xbf16, #tpu.memory_space<vmem>>, vector<16x128xbf16>,
    return
  }
  func.func @transform_0(%arg0: i32) -> (i32, i32) {
    %c0_i32 = arith.constant 0 : i32
    %c0_i32_0 = arith.constant 0 : i32
    return %arg0, %c0_i32 : i32, i32
  }
  func.func @transform_1(%arg0: i32) -> (i32, i32) {
    %c0_i32 = arith.constant 0 : i32
    %c0_i32_0 = arith.constant 0 : i32
    %c0_i32_1 = arith.constant 0 : i32
    return %c0_i32, %c0_i32_0 : i32, i32
  }
  func.func @transform_2(%arg0: i32) -> (i32, i32) {
    %c0_i32 = arith.constant 0 : i32
    %c0_i32_0 = arith.constant 0 : i32
    %c0_i32_1 = arith.constant 0 : i32
    return %c0_i32, %c0_i32_0 : i32, i32
  }
  func.func @transform_3(%arg0: i32) -> (i32, i32) {
    %c0_i32 = arith.constant 0 : i32
    %c0_i32_0 = arith.constant 0 : i32
    %c0_i32_1 = arith.constant 0 : i32
    return %c0_i32, %c0_i32_0 : i32, i32
  }
  func.func @transform_4(%arg0: i32) -> (i32, i32) {
    %c0_i32 = arith.constant 0 : i32
    %c0_i32_0 = arith.constant 0 : i32
    %c0_i32_1 = arith.constant 0 : i32
    return %c0_i32, %c0_i32_0 : i32, i32
  }
  func.func @transform_5(%arg0: i32) -> (i32, i32) {
    %c0_i32 = arith.constant 0 : i32
    %c0_i32_0 = arith.constant 0 : i32
    %c0_i32_1 = arith.constant 0 : i32
    return %c0_i32, %c0_i32_0 : i32, i32
  }
  func.func @transform_6(%arg0: i32) -> (i32, i32) {
    %c0_i32 = arith.constant 0 : i32
    %c0_i32_0 = arith.constant 0 : i32
    %c0_i32_1 = arith.constant 0 : i32
    return %c0_i32, %c0_i32_0 : i32, i32
  }
  func.func @transform_7(%arg0: i32) -> (i32, i32) {
    %c0_i32 = arith.constant 0 : i32
    %c0_i32_0 = arith.constant 0 : i32
    return %arg0, %c0_i32 : i32, i32
  }
}

</mosaic_0001>

<bundles_post_ra>
// kernel: tpu_custom_call.1
= control target key start
LH: loop header
LB: loop body
LE: loop exit
PB: predicated region body
PF: predicated region fallthrough
CT: control target
= control target key end

     0   :  { %12 = vsyncpa [#allocation3], 0  ;;  %s601_s0 = inlined_call_operand.hbm [shape: bf16[16,32], index: 0, kind: input, shape index: {}]   ;;  %s602_s1 = inlined_call_operand.hbm [shape: bf16[32,32], index: 1, kind: input, shape index: {}]   ;;  %s603_s2 = inlined_call_operand.vmem [shape: f32[1,32], index: 2, kind: input, shape index: {}]   ;;  %s604_s3 = inlined_call_operand.hbm [shape: bf16[32,32], index: 3, kind: input, shape index: {}]   ;;  %s605_s4 = inlined_call_operand.vmem [shape: f32[1,32], index: 4, kind: input, shape index: {}]   ;;  %s606_s5 = inlined_call_operand.hbm [shape: bf16[32,128], index: 5, kind: input, shape index: {}]   ;;  %s607_s6 = inlined_call_operand.vmem [shape: f32[1,128], index: 6, kind: input, shape index: {}]   ;;  %s608_s7 = inlined_call_operand.hbm [shape: bf16[16,128], index: 7, kind: output, shape index: {}]  }
   0x1   :  { %13 = vsyncpa [#allocation6], 0 }
   0x2   :  { %14 = vsyncpa [#allocation9], 0 }
   0x3   :  { %15 = vsyncpa [#allocation4], 0  ;;  %s510_s24 = smov [#allocation5]   ;;  %s511_s26 = smov [#allocation2]  }
   0x4   :  { %s33_s25 = sshll.u32 %s510_s24, 4  ;;  %s21_s27 = sshll.u32 %s511_s26, 4  ;;  %s34_s25 = int_to_ptr.vmem [resolvable:$true] %s33_s25  ;;  %s22_s27 = int_to_ptr.vmem [resolvable:$true] %s21_s27 }
   0x5   :  { %s410_s28 = scalar_lea.vmem %s34_s25, 256  ;;  %p415_p1 = scmp.lt.s32.totalorder %s34_s25, %s34_s25 }
   0x6   :  { %p411_p0 = scmp.ne.s32.totalorder %s34_s25, %s410_s28  ;;  %p416_p2 = scmp.lt.s32.totalorder %s410_s28, %s410_s28 }
   0x8   :  { %p417_p3 = por %p416_p2, %p415_p1 }
   0xa   :  { %p418_p4 = pnand %p417_p3, %p411_p0 }
   0xc   :  { %421 = shalt.err (!%p418_p4)
}
   0xd   :  { %s512_s29 = smov 64   ;;  %s513_s30 = smov 4  }
   0xe   :  { %39 = dma.hbm_to_vmem [thread:$0]  %s602_s1, 256, %s34_s25, [#allocation6], %s512_s29, %s512_s29, %s513_s30  }
   0xf   :  { %s430_s10 = scalar_lea.vmem %s22_s27, 128  ;;  %p435_p6 = scmp.lt.s32.totalorder %s22_s27, %s22_s27 }
  0x10   :  { %p431_p5 = scmp.ne.s32.totalorder %s22_s27, %s430_s10  ;;  %p436_p7 = scmp.lt.s32.totalorder %s430_s10, %s430_s10 }
  0x12   :  { %p437_p8 = por %p436_p7, %p435_p6 }
  0x14   :  { %p438_p9 = pnand %p437_p8, %p431_p5 }
  0x16   :  { %441 = shalt.err (!%p438_p9)
}
  0x17   :  { %27 = dma.hbm_to_vmem [thread:$0]  %s601_s0, 128, %s22_s27, [#allocation3], %s512_s29, %s512_s29, %s513_s30  }
  0x18   :  { %s514_s13 = smov [#allocation7]   ;;  %s515_s15 = smov [#allocation8]  }
  0x19   :  { %s47_s14 = sshll.u32 %s514_s13, 4  ;;  %s61_s16 = sshll.u32 %s515_s15, 4  ;;  %s48_s14 = int_to_ptr.vmem [resolvable:$true] %s47_s14  ;;  %s62_s16 = int_to_ptr.vmem [resolvable:$true] %s61_s16 }
  0x1a   :  { %s450_s1 = scalar_lea.vmem %s48_s14, 256  ;;  %p455_p11 = scmp.lt.s32.totalorder %s48_s14, %s48_s14 }
  0x1b   :  { %p451_p10 = scmp.ne.s32.totalorder %s48_s14, %s450_s1  ;;  %p456_p12 = scmp.lt.s32.totalorder %s450_s1, %s450_s1 }
  0x1d   :  { %p457_p13 = por %p456_p12, %p455_p11 }
  0x1f   :  { %p458_p0 = pnand %p457_p13, %p451_p10 }
  0x21   :  { %461 = shalt.err (!%p458_p0)
}
  0x22   :  { %53 = dma.hbm_to_vmem [thread:$0]  %s604_s3, 256, %s48_s14, [#allocation6], %s512_s29, %s512_s29, %s513_s30  }
  0x23   :  { %s470_s0 = scalar_lea.vmem %s62_s16, 256  ;;  %p475_p2 = scmp.lt.s32.totalorder %s62_s16, %s62_s16 }
  0x24   :  { %p471_p1 = scmp.ne.s32.totalorder %s62_s16, %s470_s0  ;;  %p476_p3 = scmp.lt.s32.totalorder %s470_s0, %s470_s0 }
  0x26   :  { %p477_p4 = por %p476_p3, %p475_p2 }
  0x28   :  { %p478_p5 = pnand %p477_p4, %p471_p1 }
  0x2a   :  { %481 = shalt.err (!%p478_p5)
}
  0x2b   :  { %67 = dma.hbm_to_vmem [thread:$0]  %s606_s5, 256, %s62_s16, [#allocation9], %s512_s29, %s512_s29, %s513_s30  }
  0x2c   :  { %502 = dma.done.wait [#allocation3], 128  }
  0x2d   :  { %503 = vsyncadd [#allocation3], 4294967168 }
  0x2e   :  { %504 = dma.done.wait [#allocation6], 512  }
  0x2f   :  { %505 = vsyncadd [#allocation6], 4294966784 }
  0x30   :  { %506 = dma.done.wait [#allocation9], 256  }
  0x31   :  { %507 = vsyncadd [#allocation9], 4294967040  ;;  %v516_v0 = vmov 0.0   ;;  %vm517_vm0 = vmmov 0   ;;  %v391_v1 = vld [vmem:[#allocation5 + $0x8] sm:$0xff]   ;;  %v392_v2 = vld [vmem:[#allocation5] sm:$0xff]  }
  0x32   :  { %358 = vmatprep.subr.bf16.mxu0 %v516_v0  ;;  %362 = vmatprep.mubr.msk.bf16.mxu0 %vm517_vm0, %v516_v0  ;;  %v393_v3 = vld [vmem:[#allocation2] sm:$0xff]   ;;  %vm113_vm1 = vcmask 261120   ;;  %v395_v5 = vld [vmem:[#allocation7] sm:$0xff]   ;;  %v396_v16 = vld [vmem:[#allocation8 + $0x8] sm:$0xff]   ;;  %s518_s24 = smov [#allocation10]  }
  0x33   :  { %366 = vmatprep.subr.bf16.mxu1 %v516_v0  ;;  %370 = vmatprep.mubr.msk.bf16.mxu1 %vm517_vm0, %v516_v0  ;;  %v394_v4 = vld [vmem:[#allocation7 + $0x8] sm:$0xff]   ;;  %v397_v17 = vld [vmem:[#allocation8] sm:$0xff]  }
  0x34   :  { %359 = vmatpush3.bf16.msra.mxu0 %v391_v1  ;;  %367 = vmatpush3.bf16.msra.mxu1 %v394_v4  ;;  %v327_v6 = vld [vmem:[%s603_s2] ss:$0 sm:$0xff] }
  0x35   :  { %360 = vmatprep.subr.bf16.mxu0 %v516_v0  ;;  %368 = vmatprep.subr.bf16.mxu1 %v516_v0  ;;  %v332_v18 = vld [vmem:[%s605_s4] ss:$0 sm:$0xff]  ;;  %s313_s4 = sshll.u32 %s518_s24, 4  ;;  %s314_s4 = int_to_ptr.vmem [resolvable:$true] %s313_s4 }
  0x36   :  { %v336_v29 = vld [vmem:[%s607_s6] ss:$0 sm:$0xff]  ;;  %s482_s25 = scalar_lea.vmem %s314_s4, 128  ;;  %p487_p7 = scmp.lt.s32.totalorder %s314_s4, %s314_s4 }
  0x37   :  { %p483_p6 = scmp.ne.s32.totalorder %s314_s4, %s482_s25  ;;  %p488_p8 = scmp.lt.s32.totalorder %s482_s25, %s482_s25 }
  0x38   :  { %361 = vmatpush3.bf16.msra.mxu0 %v392_v2  ;;  %369 = vmatpush3.bf16.msra.mxu1 %v395_v5 }
  0x39   :  { %374 = vmatprep.subr.bf16.mxu0 %v516_v0  ;;  %p489_p9 = por %p488_p8, %p487_p7 }
  0x3b   :  { %363 = vmatmul.mubr.msk.bf16.vlgmr.msra.gmra.mxu0 %vm113_vm1, %v393_v3  ;;  %p490_p10 = pnand %p489_p9, %p483_p6 }
  0x3c   :  { %378 = vmatprep.mubr.msk.bf16.mxu0 %vm517_vm0, %v516_v0  ;;  %375 = vmatpush3.bf16.msra.mxu0 %v396_v16 }
  0x3d   :  { %376 = vmatprep.subr.bf16.mxu0 %v516_v0 }
  0x40   :  { %377 = vmatpush3.bf16.msra.mxu0 %v397_v17 }
  0xfb   :  { %v151_v7 = vpop.f32.mrf.mxu0 }
  0xfc   :  { %v152_v8 = vadd.f32 %v327_v6, %v151_v7 }
  0xfd   :  { %v364_v9 = vpop.f32.mrf.mxu0 }
  0xfe   :  { %398 = vtanh.f32 %v152_v8 }
  0xff   :  { %v154_v10 = vpop.f32.mrf.mxu0 }
 0x100   :  { %v155_v11 = vadd.f32 %v327_v6, %v154_v10 }
 0x101   :  { %v365_v12 = vpop.f32.mrf.mxu0 }
 0x102   :  { %400 = vtanh.f32 %v155_v11 }
 0x10b   :  { %v399_v13 = vpop.eup %398 }
 0x10f   :  { %v401_v14 = vpop.eup %400 }
 0x110   :  { %v160_v15 = vpack.c.bf16 %v401_v14, %v399_v13 }
 0x112   :  { %371 = vmatmul.mubr.msk.bf16.vlgmr.msra.gmra.mxu1 %vm113_vm1, %v160_v15 }
 0x1d2   :  { %v221_v19 = vpop.f32.mrf.mxu1 }
 0x1d3   :  { %v222_v21 = vadd.f32 %v332_v18, %v221_v19 }
 0x1d4   :  { %v372_v20 = vpop.f32.mrf.mxu1 }
 0x1d5   :  { %v228_v25 = vmax.f32 %v222_v21, 0.0 }
 0x1d6   :  { %v224_v22 = vpop.f32.mrf.mxu1 }
 0x1d7   :  { %v225_v23 = vadd.f32 %v332_v18, %v224_v22 }
 0x1d8   :  { %v373_v24 = vpop.f32.mrf.mxu1 }
 0x1d9   :  { %v229_v26 = vmax.f32 %v225_v23, 0.0 }
 0x1db   :  { %v230_v27 = vpack.c.bf16 %v229_v26, %v228_v25 }
 0x1dd   :  { %379 = vmatmul.mubr.msk.bf16.vlgmr.msra.gmra.mxu0 %vm113_vm1, %v230_v27 }
 0x29d   :  { %v291_v28 = vpop.f32.mrf.mxu0 }
 0x29e   :  { %v292_v32 = vadd.f32 %v336_v29, %v291_v28 }
 0x29f   :  { %v380_v30 = vpop.f32.mrf.mxu0 }
 0x2a1   :  { %v294_v31 = vpop.f32.mrf.mxu0 }
 0x2a2   :  { %v295_v33 = vadd.f32 %v336_v29, %v294_v31 }
 0x2a3   :  { %v381_v34 = vpop.f32.mrf.mxu0 }
 0x2a4   :  { %v347_v35 = vpack.c.bf16 %v295_v33, %v292_v32 }
 0x2a6   :  { %348 = vst [vmem:[#allocation10] sm:$0xff] %v347_v35  }
 0x2a7   :  { %493 = shalt.err (!%p490_p10)
}
 0x2a8   :  { %319 = dma.vmem_to_hbm [thread:$0]  %s314_s4, 128, %s608_s7, [#allocation4], %s512_s29, %s512_s29, %s513_s30  }
 0x2a9   :  { %508 = dma.done.wait [#allocation4], 128  }
 0x2aa   :  { %509 = vsyncadd [#allocation4], 4294967168 }
 0x2ab   :  { %323 = vsyncpa [#allocation3], 1 }
 0x2ac   :  { %324 = vsyncpa [#allocation6], 1 }
 0x2ad   :  { %325 = vsyncpa [#allocation9], 1 }
 0x2ae   :  { %326 = vsyncpa [#allocation4], 1 }

</bundles_post_ra>
